<compile_context>
chip_gen: v6e
topology: v6e:2x2x1
jax: 0.10.0
libtpu: 0.0.40
codegen_flags: <defaults>
</compile_context>

<pallas_src>
import math
import functools

import jax
import jax.numpy as jnp
from jax.experimental import pallas as pl
from jax.experimental.pallas import tpu as pltpu

EPS = 1e-5
INV_SQRT2 = 0.7071067811865476


def _layernorm(x, w, b):
    mu = jnp.mean(x, axis=-1, keepdims=True)
    var = jnp.mean((x - mu) ** 2, axis=-1, keepdims=True)
    return (x - mu) * jax.lax.rsqrt(var + EPS) * w + b


# ------------------------- kernel 1: patch embedding -------------------------
# conv(kernel=stride=patch) as a matmul, + LayerNorm + pos embed.  Runs once per
# batch element (grid=(B,), "parallel"); its operands do not occupy VMEM while
# the encoder layers run.

def patch_embed_kernel(patches_ref, pw_ref, pb_ref, lnw_ref, lnb_ref, pos_ref, o_ref):
    y = jnp.dot(patches_ref[...], pw_ref[...],
                preferred_element_type=jnp.float32) + pb_ref[...]
    y = _layernorm(y, lnw_ref[...], lnb_ref[...])
    o_ref[...] = y + pos_ref[...]


# --------------------- kernel 2: fused encoder layer loop --------------------
# grid = (B, L): batch axis "parallel", layer axis "arbitrary".  The (N, D)
# activation block of batch b stays resident in VMEM across all L layer steps
# (output BlockSpec index constant over the layer axis); per-layer weights are
# streamed (double-buffered) in bf16.

def encoder_kernel(nhead,
                   x0_ref,
                   wqkv_ref, bqkv_ref, wo_ref, bo_ref,
                   n1w_ref, n1b_ref, n2w_ref, n2b_ref,
                   w1_ref, b1_ref, w2_ref, b2_ref,
                   o_ref):
    layer = pl.program_id(1)

    @pl.when(layer == 0)
    def _():
        # initialize resident activations (write happens before any read below)
        o_ref[...] = x0_ref[...]

    x = o_ref[...]                        # (N, D) f32, resident across the layer axis
    N, D = x.shape
    H = nhead
    dh = D // H
    scale = 1.0 / math.sqrt(dh)
    bf16 = jnp.bfloat16

    # --- self-attention block: x = x + out_proj(MHA(norm1(x))) ---
    xn = _layernorm(x, n1w_ref[...], n1b_ref[...])
    # one lane-dense (N, D) x (D, 3D) matmul for Q, K and V together
    qkv = jnp.dot(xn.astype(bf16), wqkv_ref[...],
                  preferred_element_type=jnp.float32) + bqkv_ref[...]       # (N, 3D) f32
    q = jnp.transpose(qkv[:, :D].reshape(N, H, dh), (1, 0, 2))              # (H, N, dh)
    k = jnp.transpose(qkv[:, D:2 * D].reshape(N, H, dh), (1, 0, 2))
    v = jnp.transpose(qkv[:, 2 * D:].reshape(N, H, dh), (1, 0, 2))

    # TODO(synk): for production N (>=197) / larger B, replace the dense (H, N, N)
    # scores with a flash-style online-softmax loop over KV blocks.
    s = jnp.einsum('hqd,hkd->hqk', q, k, preferred_element_type=jnp.float32) * scale
    s = s - jnp.max(s, axis=-1, keepdims=True)
    e = jnp.exp(s)
    p = e * pl.reciprocal(jnp.sum(e, axis=-1, keepdims=True), approx=True)
    o = jnp.einsum('hqk,hkd->hqd', p, v, preferred_element_type=jnp.float32)  # (H, N, dh)

    # concat heads along the lane axis -> single lane-dense (N, D) x (D, D) projection
    o = jnp.transpose(o, (1, 0, 2)).reshape(N, D)
    attn = jnp.dot(o.astype(bf16), wo_ref[...],
                   preferred_element_type=jnp.float32) + bo_ref[...]
    x = x + attn

    # --- feed-forward block: x = x + W2(gelu(W1(norm2(x)))) ---
    xn2 = _layernorm(x, n2w_ref[...], n2b_ref[...])
    h1 = jnp.dot(xn2.astype(bf16), w1_ref[...],
                 preferred_element_type=jnp.float32) + b1_ref[...]
    # exact-erf GELU (PyTorch F.gelu default semantics)
    # TODO(synk): optionally switch to tanh-approx GELU (EUP slot) if exact erf is not required.
    h1 = 0.5 * h1 * (1.0 + jax.lax.erf(h1 * INV_SQRT2))
    h2 = jnp.dot(h1.astype(bf16), w2_ref[...],
                 preferred_element_type=jnp.float32) + b2_ref[...]
    o_ref[...] = x + h2


# ----------------------------- wrapper / glue -----------------------------


def vit_forward(x_img, params, *, patch_size, nhead):
    B, C, Himg, Wimg = x_img.shape
    ps = patch_size
    Hg, Wg = Himg // ps, Wimg // ps
    N = Hg * Wg
    D = params["proj_w"].shape[0]
    P = C * ps * ps
    L = len(params["layers"])
    FF = params["layers"][0]["w1"].shape[0]

    # Patch extraction: NCHW -> (B, N, C*p*p); feature order (C, ph, pw) matches conv kernel.
    patches = (x_img.reshape(B, C, Hg, ps, Wg, ps)
                    .transpose(0, 2, 4, 1, 3, 5)
                    .reshape(B, N, P))

    pw_t = params["proj_w"].T                       # (P, D)
    pos = params["pos_embed"].reshape(N, D)

    # ---- patch embed + LN + pos_embed (one-time; f32) ----
    x0 = pl.pallas_call(
        patch_embed_kernel,
        out_shape=jax.ShapeDtypeStruct((B, N, D), jnp.float32),
        grid=(B,),
        in_specs=[
            pl.BlockSpec((None, N, P), lambda b: (b, 0, 0)),   # patches (per-batch)
            pl.BlockSpec((P, D), lambda b: (0, 0)),            # proj weight (pre-transposed)
            pl.BlockSpec((1, D), lambda b: (0, 0)),            # proj bias
            pl.BlockSpec((1, D), lambda b: (0, 0)),            # patch-embed LN gamma
            pl.BlockSpec((1, D), lambda b: (0, 0)),            # patch-embed LN beta
            pl.BlockSpec((N, D), lambda b: (0, 0)),            # pos embed
        ],
        out_specs=pl.BlockSpec((None, N, D), lambda b: (b, 0, 0)),
        compiler_params=pltpu.CompilerParams(dimension_semantics=("parallel",)),
    )(patches, pw_t, params["proj_b"], params["pe_ln_w"], params["pe_ln_b"], pos)

    # ---- stack + pre-transpose per-layer weights (matmul operands in bf16) ----
    def stack(fn, dtype=None):
        s = jnp.stack([fn(lp) for lp in params["layers"]], axis=0)
        return s.astype(dtype) if dtype is not None else s

    bf16 = jnp.bfloat16
    wqkv_s = stack(lambda lp: lp["win"].T, bf16)      # (L, D, 3D)  fused QKV weight
    bqkv_s = stack(lambda lp: lp["bin"])              # (L, 1, 3D)  f32
    wo_s   = stack(lambda lp: lp["wout"].T, bf16)     # (L, D, D)
    bo_s   = stack(lambda lp: lp["bout"])             # (L, 1, D)
    n1w_s  = stack(lambda lp: lp["n1w"])
    n1b_s  = stack(lambda lp: lp["n1b"])
    n2w_s  = stack(lambda lp: lp["n2w"])
    n2b_s  = stack(lambda lp: lp["n2b"])
    w1_s   = stack(lambda lp: lp["w1"].T, bf16)       # (L, D, FF)
    b1_s   = stack(lambda lp: lp["b1"])               # (L, 1, FF)
    w2_s   = stack(lambda lp: lp["w2"].T, bf16)       # (L, FF, D)
    b2_s   = stack(lambda lp: lp["b2"])               # (L, 1, D)

    def layer_spec(shape):
        zeros = (0,) * (len(shape) - 1)
        return pl.BlockSpec((None,) + shape[1:], lambda b, l, z=zeros: (l,) + z)

    out = pl.pallas_call(
        functools.partial(encoder_kernel, nhead),
        out_shape=jax.ShapeDtypeStruct((B, N, D), jnp.float32),
        grid=(B, L),
        in_specs=[
            pl.BlockSpec((None, N, D), lambda b, l: (b, 0, 0)),  # x0 (read at layer 0)
            layer_spec((L, D, 3 * D)),     # fused Wqkv (bf16)
            layer_spec((L, 1, 3 * D)),     # fused bqkv
            layer_spec((L, D, D)),         # Wout (bf16)
            layer_spec((L, 1, D)),         # bout
            layer_spec((L, 1, D)),         # norm1 gamma
            layer_spec((L, 1, D)),         # norm1 beta
            layer_spec((L, 1, D)),         # norm2 gamma
            layer_spec((L, 1, D)),         # norm2 beta
            layer_spec((L, D, FF)),        # W1 (bf16)
            layer_spec((L, 1, FF)),        # b1
            layer_spec((L, FF, D)),        # W2 (bf16)
            layer_spec((L, 1, D)),         # b2
        ],
        out_specs=pl.BlockSpec((None, N, D), lambda b, l: (b, 0, 0)),  # resident across layers
        compiler_params=pltpu.CompilerParams(
            dimension_semantics=("parallel", "arbitrary"),
            # explicit VMEM budget; re-derive per generation (v7x: 64 MiB physical)
            # before scaling to ViT-B shapes.
            vmem_limit_bytes=48 * 1024 * 1024),
    )(x0, wqkv_s, bqkv_s, wo_s, bo_s,
      n1w_s, n1b_s, n2w_s, n2b_s,
      w1_s, b1_s, w2_s, b2_s)

    return out


# --------------------------- deterministic params --------------------------


def init_vit_params(key, *, img_size, patch_size, in_c, embed_dim, num_layers):
    grid = img_size // patch_size
    N = grid * grid
    P = in_c * patch_size * patch_size
    D = embed_dim
    FF = 4 * D
    keys = iter(jax.random.split(key, 16 + 10 * num_layers))

    def nrm(shape, scale=0.02):
        return jax.random.normal(next(keys), shape, jnp.float32) * scale

    params = {
        "proj_w": nrm((D, P)),                 # conv weight flattened (D, C*p*p)
        "proj_b": nrm((1, D)),
        "pe_ln_w": jnp.ones((1, D), jnp.float32),
        "pe_ln_b": jnp.zeros((1, D), jnp.float32),
        "pos_embed": jax.random.truncated_normal(
            next(keys), -2.0, 2.0, (1, N, D), jnp.float32) * 0.02,
        "layers": [],
    }
    for _ in range(num_layers):
        params["layers"].append({
            "win": nrm((3 * D, D)), "bin": nrm((1, 3 * D)),
            "wout": nrm((D, D)), "bout": nrm((1, D)),
            "n1w": jnp.ones((1, D), jnp.float32), "n1b": jnp.zeros((1, D), jnp.float32),
            "n2w": jnp.ones((1, D), jnp.float32), "n2b": jnp.zeros((1, D), jnp.float32),
            "w1": nrm((FF, D)), "b1": nrm((1, FF)),
            "w2": nrm((D, FF)), "b2": nrm((1, D)),
        })
    return params


# ------------------------------ pure-JAX reference --------------------------


def vit_reference(x_img, params, *, patch_size, nhead):
    B, C, H, W = x_img.shape
    p = patch_size
    Hg, Wg = H // p, W // p
    N = Hg * Wg
    D = params["proj_w"].shape[0]
    P = C * p * p
    hi = jax.lax.Precision.HIGHEST

    patches = (x_img.reshape(B, C, Hg, p, Wg, p)
                    .transpose(0, 2, 4, 1, 3, 5)
                    .reshape(B, N, P))
    x = jnp.einsum("bnp,dp->bnd", patches, params["proj_w"], precision=hi) + params["proj_b"]
    x = _layernorm(x, params["pe_ln_w"], params["pe_ln_b"]) + params["pos_embed"]

    dh = D // nhead
    for lp in params["layers"]:
        xn = _layernorm(x, lp["n1w"], lp["n1b"])
        qkv = jnp.einsum("bnd,ed->bne", xn, lp["win"], precision=hi) + lp["bin"]
        q, k, v = qkv[..., :D], qkv[..., D:2 * D], qkv[..., 2 * D:]
        q = q.reshape(B, N, nhead, dh).transpose(0, 2, 1, 3)
        k = k.reshape(B, N, nhead, dh).transpose(0, 2, 1, 3)
        v = v.reshape(B, N, nhead, dh).transpose(0, 2, 1, 3)
        s = jnp.einsum("bhqd,bhkd->bhqk", q, k, precision=hi) / math.sqrt(dh)
        pattn = jax.nn.softmax(s, axis=-1)
        o = jnp.einsum("bhqk,bhkd->bhqd", pattn, v, precision=hi)
        o = o.transpose(0, 2, 1, 3).reshape(B, N, D)
        attn = jnp.einsum("bnd,ed->bne", o, lp["wout"], precision=hi) + lp["bout"]
        x = x + attn

        xn2 = _layernorm(x, lp["n2w"], lp["n2b"])
        h1 = jnp.einsum("bnd,fd->bnf", xn2, lp["w1"], precision=hi) + lp["b1"]
        h1 = 0.5 * h1 * (1.0 + jax.lax.erf(h1 * INV_SQRT2))
        h2 = jnp.einsum("bnf,df->bnd", h1, lp["w2"], precision=hi) + lp["b2"]
        x = x + h2
    return x


# ----------------------------------- main -----------------------------------


if __name__ == "__main__":
    # Small but lane-dense config: img 16x16, patch 4 -> 16 patches, embed_dim 128
    # (lane width), 8 heads, 2 layers, batch 2.
    img_size, patch_size, in_c = 16, 4, 1
    embed_dim, nhead, num_layers = 128, 8, 2
    B = 2

    key = jax.random.PRNGKey(0)
    pkey, xkey = jax.random.split(key)
    params = init_vit_params(pkey, img_size=img_size, patch_size=patch_size,
                             in_c=in_c, embed_dim=embed_dim, num_layers=num_layers)
    x = jax.random.normal(xkey, (B, in_c, img_size, img_size), jnp.float32)

    out = vit_forward(x, params, patch_size=patch_size, nhead=nhead)
    out = jax.block_until_ready(out)

    expected_shape = (B, (img_size // patch_size) ** 2, embed_dim)
    assert out.shape == expected_shape, (out.shape, expected_shape)

    ref = vit_reference(x, params, patch_size=patch_size, nhead=nhead)
    max_err = float(jnp.max(jnp.abs(out - ref)))
    # Tolerance accounts for bf16 layer-weight matmuls (f32 accumulation) and the
    # EUP-approx softmax reciprocal.
    assert max_err < 3e-2, f"max abs err vs reference: {max_err}"

    print("KERNEL_OK")
</pallas_src>

<mosaic_0001>
module attributes {stable_mosaic.version = 11 : i64} {
  func.func @patch_embed_kernel(%arg0: i32, %arg1: memref<1x16x16xf32, #tpu.memory_space<vmem>>, %arg2: memref<16x128xf32, #tpu.memory_space<vmem>>, %arg3: memref<1x128xf32, #tpu.memory_space<vmem>>, %arg4: memref<1x128xf32, #tpu.memory_space<vmem>>, %arg5: memref<1x128xf32, #tpu.memory_space<vmem>>, %arg6: memref<16x128xf32, #tpu.memory_space<vmem>>, %arg7: memref<1x16x128xf32, #tpu.memory_space<vmem>>) attributes {dimension_semantics = [#tpu.dimension_semantics<parallel>], iteration_bounds = array<i64: 2>, scalar_prefetch = 0 : i64, scratch_operands = 0 : i64, tpu.core_type = #tpu.core_type<tc>, window_params = [{transform_indices = @transform_0, window_bounds = array<i64: 1, 16, 16>}, {pipeline_mode = #tpu.pipeline_mode<synchronous>, transform_indices = @transform_1, window_bounds = array<i64: 16, 128>}, {pipeline_mode = #tpu.pipeline_mode<synchronous>, transform_indices = @transform_2, window_bounds = array<i64: 1, 128>}, {pipeline_mode = #tpu.pipeline_mode<synchronous>, transform_indices = @transform_3, window_bounds = array<i64: 1, 128>}, {pipeline_mode = #tpu.pipeline_mode<synchronous>, transform_indices = @transform_4, window_bounds = array<i64: 1, 128>}, {pipeline_mode = #tpu.pipeline_mode<synchronous>, transform_indices = @transform_5, window_bounds = array<i64: 16, 128>}, {transform_indices = @transform_6, window_bounds = array<i64: 1, 16, 128>}]} {
    %c0 = arith.constant 0 : index
    %c0_0 = arith.constant 0 : index
    %c0_1 = arith.constant 0 : index
    %0 = vector.load %arg1[%c0, %c0_0, %c0_1] : memref<1x16x16xf32, #tpu.memory_space<vmem>>, vector<1x16x16xf32>
    %1 = vector.shape_cast %0 : vector<1x16x16xf32> to vector<16x16xf32>
    %c0_2 = arith.constant 0 : index
    %c0_3 = arith.constant 0 : index
    %2 = vector.load %arg2[%c0_2, %c0_3] : memref<16x128xf32, #tpu.memory_space<vmem>>, vector<16x128xf32>
    %cst = arith.constant dense<0.000000e+00> : vector<16x128xf32>
    %3 = tpu.matmul %1, %2, %cst {dimension_numbers = #tpu.dot_dimension_numbers<[1], [0], [0], [1], [0, 0, 1, 1], [], []>} : vector<16x16xf32>, vector<16x128xf32>, vector<16x128xf32> -> vector<16x128xf32>
    %c0_4 = arith.constant 0 : index
    %c0_5 = arith.constant 0 : index
    %4 = vector.load %arg3[%c0_4, %c0_5] : memref<1x128xf32, #tpu.memory_space<vmem>>, vector<1x128xf32>
    %5 = vector.broadcast %4 : vector<1x128xf32> to vector<16x128xf32>
    %6 = arith.addf %3, %5 : vector<16x128xf32>
    %c0_6 = arith.constant 0 : index
    %c0_7 = arith.constant 0 : index
    %7 = vector.load %arg4[%c0_6, %c0_7] : memref<1x128xf32, #tpu.memory_space<vmem>>, vector<1x128xf32>
    %c0_8 = arith.constant 0 : index
    %c0_9 = arith.constant 0 : index
    %8 = vector.load %arg5[%c0_8, %c0_9] : memref<1x128xf32, #tpu.memory_space<vmem>>, vector<1x128xf32>
    %cst_10 = arith.constant dense<0.000000e+00> : vector<16xf32>
    %9 = vector.multi_reduction <add>, %6, %cst_10 [1] : vector<16x128xf32> to vector<16xf32>
    %10 = vector.shape_cast %9 : vector<16xf32> to vector<16x1xf32>
    %cst_11 = arith.constant 1.280000e+02 : f32
    %11 = vector.broadcast %cst_11 : f32 to vector<16x1xf32>
    %12 = arith.divf %10, %11 : vector<16x1xf32>
    %13 = vector.broadcast %12 : vector<16x1xf32> to vector<16x128xf32>
    %14 = arith.subf %6, %13 : vector<16x128xf32>
    %15 = arith.mulf %14, %14 : vector<16x128xf32>
    %cst_12 = arith.constant dense<0.000000e+00> : vector<16xf32>
    %16 = vector.multi_reduction <add>, %15, %cst_12 [1] : vector<16x128xf32> to vector<16xf32>
    %17 = vector.shape_cast %16 : vector<16xf32> to vector<16x1xf32>
    %cst_13 = arith.constant 1.280000e+02 : f32
    %18 = vector.broadcast %cst_13 : f32 to vector<16x1xf32>
    %19 = arith.divf %17, %18 : vector<16x1xf32>
    %20 = vector.broadcast %12 : vector<16x1xf32> to vector<16x128xf32>
    %21 = arith.subf %6, %20 : vector<16x128xf32>
    %cst_14 = arith.constant 9.99999974E-6 : f32
    %22 = vector.broadcast %cst_14 : f32 to vector<16x1xf32>
    %23 = arith.addf %19, %22 : vector<16x1xf32>
    %24 = math.rsqrt %23 : vector<16x1xf32>
    %25 = vector.broadcast %24 : vector<16x1xf32> to vector<16x128xf32>
    %26 = arith.mulf %21, %25 : vector<16x128xf32>
    %27 = vector.broadcast %7 : vector<1x128xf32> to vector<16x128xf32>
    %28 = arith.mulf %26, %27 : vector<16x128xf32>
    %29 = vector.broadcast %8 : vector<1x128xf32> to vector<16x128xf32>
    %30 = arith.addf %28, %29 : vector<16x128xf32>
    %c0_15 = arith.constant 0 : index
    %c0_16 = arith.constant 0 : index
    %31 = vector.load %arg6[%c0_15, %c0_16] : memref<16x128xf32, #tpu.memory_space<vmem>>, vector<16x128xf32>
    %32 = arith.addf %30, %31 : vector<16x128xf32>
    %c0_17 = arith.constant 0 : index
    %c0_18 = arith.constant 0 : index
    %c0_19 = arith.constant 0 : index
    %33 = vector.load %arg7[%c0_17, %c0_18, %c0_19] : memref<1x16x128xf32, #tpu.memory_space<vmem>>, vector<1x16x128xf32>
    %34 = vector.shape_cast %33 : vector<1x16x128xf32> to vector<16x128xf32>
    %35 = vector.shape_cast %32 : vector<16x128xf32> to vector<1x16x128xf32>
    tpu.vector_store %arg7[%c0_17, %c0_18, %c0_19], %35 {strides = array<i32>} : memref<1x16x128xf32, #tpu.memory_space<vmem>>, vector<1x16x128xf32>,
    return
  }
  func.func @transform_0(%arg0: i32) -> (i32, i32, i32) {
    %c0_i32 = arith.constant 0 : i32
    %c0_i32_0 = arith.constant 0 : i32
    %c0_i32_1 = arith.constant 0 : i32
    return %arg0, %c0_i32, %c0_i32_0 : i32, i32, i32
  }
  func.func @transform_1(%arg0: i32) -> (i32, i32) {
    %c0_i32 = arith.constant 0 : i32
    %c0_i32_0 = arith.constant 0 : i32
    %c0_i32_1 = arith.constant 0 : i32
    return %c0_i32, %c0_i32_0 : i32, i32
  }
  func.func @transform_2(%arg0: i32) -> (i32, i32) {
    %c0_i32 = arith.constant 0 : i32
    %c0_i32_0 = arith.constant 0 : i32
    %c0_i32_1 = arith.constant 0 : i32
    return %c0_i32, %c0_i32_0 : i32, i32
  }
  func.func @transform_3(%arg0: i32) -> (i32, i32) {
    %c0_i32 = arith.constant 0 : i32
    %c0_i32_0 = arith.constant 0 : i32
    %c0_i32_1 = arith.constant 0 : i32
    return %c0_i32, %c0_i32_0 : i32, i32
  }
  func.func @transform_4(%arg0: i32) -> (i32, i32) {
    %c0_i32 = arith.constant 0 : i32
    %c0_i32_0 = arith.constant 0 : i32
    %c0_i32_1 = arith.constant 0 : i32
    return %c0_i32, %c0_i32_0 : i32, i32
  }
  func.func @transform_5(%arg0: i32) -> (i32, i32) {
    %c0_i32 = arith.constant 0 : i32
    %c0_i32_0 = arith.constant 0 : i32
    %c0_i32_1 = arith.constant 0 : i32
    return %c0_i32, %c0_i32_0 : i32, i32
  }
  func.func @transform_6(%arg0: i32) -> (i32, i32, i32) {
    %c0_i32 = arith.constant 0 : i32
    %c0_i32_0 = arith.constant 0 : i32
    %c0_i32_1 = arith.constant 0 : i32
    return %arg0, %c0_i32, %c0_i32_0 : i32, i32, i32
  }
}

</mosaic_0001>

<bundles_post_ra>
// kernel: tpu_custom_call.1
= control target key start
LH: loop header
LB: loop body
LE: loop exit
PB: predicated region body
PF: predicated region fallthrough
CT: control target
= control target key end

     0   :  { %11 = vsyncpa [#allocation3], 0  ;;  %s1059_s0 = inlined_call_operand.hbm [shape: f32[2,16,16], index: 0, kind: input, shape index: {}]   ;;  %s1060_s1 = inlined_call_operand.hbm [shape: f32[16,128], index: 1, kind: input, shape index: {}]   ;;  %s1061_s2 = inlined_call_operand.vmem [shape: f32[1,128], index: 2, kind: input, shape index: {}]   ;;  %s1062_s3 = inlined_call_operand.vmem [shape: f32[1,128], index: 3, kind: input, shape index: {}]   ;;  %s1063_s4 = inlined_call_operand.vmem [shape: f32[1,128], index: 4, kind: input, shape index: {}]   ;;  %s1064_s5 = inlined_call_operand.hbm [shape: f32[16,128], index: 5, kind: input, shape index: {}]   ;;  %s1065_s6 = inlined_call_operand.hbm [shape: f32[2,16,128], index: 6, kind: output, shape index: {}]  }
   0x1   :  { %13 = vsyncpa [#allocation3 + $0x1], 0 }
   0x2   :  { %14 = vsyncpa [#allocation6], 0 }
   0x3   :  { %15 = vsyncpa [#allocation4], 0 }
   0x4   :  { %17 = vsyncpa [#allocation4 + $0x1], 0  ;;  %s849_s21 = smov 0   ;;  %s851_s22 = smov 0  }
   0x5   :  { %s853_s23 = smov 0   ;;  %s855_s24 = smov 0  }
   0x6 LB: > { %s870_s25 = sadd.s32 4294967295, %s804_s24   ;;  %s545_s26 = sadd.s32 4294967294, %s804_s24   ;;  %s804_s24 = sphi %s855_s24, %s1090_s24   ;;  %s800_s23 = sphi %s853_s23, %s1089_s23   ;;  %s796_s22 = sphi %s851_s22, %s1088_s22   ;;  %s792_s21 = sphi %s849_s21, %s1087_s21  }
   0x7   : > { %p43_p0 = scmp.ne.s32.totalorder %s796_s22, %s792_s21  ;;  %p1066_p1 = scmp.eq.s32.totalorder %s870_s25, 0 }
   0x8   : > { %p172_p2 = scmp.eq.s32.totalorder %s870_s25, 1  ;;  %p178_p3 = scmp.eq.s32.totalorder %s545_s26, 1 }
   0x9   : > { %p879_p4 = por %p1066_p1, %p43_p0  ;;  %p546_p5 = scmp.ge.s32.totalorder %s804_s24, 1 }
   0xa   : > { %p884_p6 = por %p178_p3, %p43_p0  ;;  %p185_p7 = scmp.lt.s32.totalorder %s804_s24, 3 }
   0xb   : > { %s1072_s27 = scalar_select %p879_p4, 1, 0 }
   0xc   : > { %s1073_s28 = scalar_select %p884_p6, 1, 0 }
   0xd   : > { %p889_p8 = pnand %p546_p5, %p185_p7  ;;  %s806_s30 = smov [#allocation5]  }
   0xe   : > { %s197_s7 = sshll.u32 %s806_s30, 4  ;;  %s807_s9 = smov [#allocation7]   ;;  %s198_s7 = int_to_ptr.vmem [resolvable:$true] %s197_s7 }
   0xf   : > { %s1074_s29 = scalar_select %p889_p8, 1, 0 }
  0x10   : > { %p593_p9 = pneg %p889_p8  ;;  %s219_s10 = sshll.u32 %s807_s9, 4  ;;  %s220_s10 = int_to_ptr.vmem [resolvable:$true] %s219_s10 }
  0x11   : > { %s667_s11 = scalar_lea.vmem %s198_s7, 256  ;;  %p675_p5 = scmp.lt.s32.totalorder %s198_s7, %s198_s7 }
  0x12   : > { %p898_p11 = pnand %p593_p9, %p1066_p1  ;;  %p668_p13 = scmp.ne.s32.totalorder %s198_s7, %s667_s11 }
  0x13   : > { %p676_p7 = scmp.lt.s32.totalorder %s667_s11, %s667_s11 }
  0x14   : > { %p658_p12 = pneg %p898_p11 }
  0x15   : > { %p677_p10 = por %p676_p7, %p675_p5 }
  0x16   : > { %p670_p0 = pnand %p668_p13, %p658_p12 }
  0x18   : > { %p671_p3 = pneg %p670_p0 }
  0x1a   : > { %p678_p9 = pnand %p677_p10, %p671_p3 }
  0x1c   : > { %681 = shalt.err (!%p678_p9)
}
  0x1d   : > { %s1067_s12 = smov 128   ;;  %s1068_s13 = smov 8  }
  0x1e   : > { %596 = dma.hbm_to_vmem [thread:$0]  (!%p898_p11), %s1060_s1, 256, %s198_s7, [#allocation6], %s1067_s12, %s1067_s12, %s1068_s13  }
  0x1f   : > { %s693_s16 = scalar_lea.vmem %s220_s10, 256  ;;  %p701_p10 = scmp.lt.s32.totalorder %s220_s10, %s220_s10 }
  0x20   : > { %p694_p13 = scmp.ne.s32.totalorder %s220_s10, %s693_s16  ;;  %p702_p3 = scmp.lt.s32.totalorder %s693_s16, %s693_s16 }
  0x22   : > { %p696_p0 = pnand %p694_p13, %p658_p12  ;;  %p703_p7 = por %p702_p3, %p701_p10 }
  0x24   : > { %p697_p5 = pneg %p696_p0 }
  0x26   : > { %p704_p9 = pnand %p703_p7, %p697_p5 }
  0x28   : > { %707 = shalt.err (!%p704_p9)
}
  0x29   : > { %599 = dma.hbm_to_vmem [thread:$0]  (!%p898_p11), %s1064_s5, 256, %s220_s10, [#allocation6], %s1067_s12, %s1067_s12, %s1068_s13  }
  0x2a   : > { %s927_s19 = sadd.s32 1, %s804_s24   ;;  %s30_s20 = sadd.s32 1, %s800_s23 }
  0x2b   : > { %s27_s26 = ssub.s32 %s804_s24, %s927_s19  ;;  %p37_p12 = scmp.ne.s32.totalorder %s800_s23, %s796_s22 }
  0x2c   : > { %p28_p13 = scmp.eq.s32.totalorder %s27_s26, 0  ;;  %p38_p0 = scmp.eq.s32.totalorder %s804_s24, 0 }
  0x2d   : > { %p937_p5 = por %p172_p2, %p37_p12  ;;  %p610_p10 = scmp.lt.s32.totalorder %s804_s24, 2 }
  0x2e   : > { %s943_s7 = scalar_select %p28_p13, %s800_s23, %s30_s20  }
  0x2f   : > { %s1076_s30 = scalar_select %p937_p5, 1, 0 }
  0x30   : > { %p39_p3 = por %p38_p0, %p37_p12  ;;  %s233_s8 = sand.u32 1, %s800_s23  }
  0x31   : > { %s550_s9 = sshll.u32 %s233_s8, 4  ;;  %s568_s10 = sshll.u32 %s804_s24, 8 }
  0x32   : > { %s950_s15 = scalar_lea.hbm %s1059_s0, %s568_s10  ;;  %s237_s16 = scalar_lea.vmem [#allocation2], %s550_s9 }
  0x33   : > { %s244_s17 = sshll.u32 %s237_s16, 4  ;;  %p954_p2 = pnand %p610_p10, %p39_p3  ;;  %s952_s17 = int_to_ptr.vmem [resolvable:$true] %s244_s17 }
  0x34   : > { %s958_s20 = scalar_lea.sflag [#allocation3], %s233_s8  ;;  %s708_s26 = scalar_lea.hbm %s950_s15, 256 }
  0x35   : > { %p709_p11 = scmp.ne.s32.totalorder %s950_s15, %s708_s26  ;;  %p710_p7 = pneg %p954_p2 }
  0x36   : > { %s713_s9 = scalar_lea.hbm %s1059_s0, 512  ;;  %p714_p13 = scmp.lt.s32.totalorder %s950_s15, %s1059_s0 }
  0x37   : > { %p711_p9 = pnand %p710_p7, %p709_p11  ;;  %p715_p0 = scmp.lt.s32.totalorder %s713_s9, %s708_s26 }
  0x39   : > { %p712_p12 = pneg %p711_p9  ;;  %p716_p10 = por %p715_p0, %p714_p13 }
  0x3b   : > { %p717_p3 = pnand %p716_p10, %p712_p12 }
  0x3d   : > { %720 = shalt.err (!%p717_p3)
}
  0x3e   : > { %s721_s8 = scalar_lea.vmem %s952_s17, 256  ;;  %s810_s12 = smov [#allocation2]  }
  0x3f   : > { %p722_p1 = scmp.ne.s32.totalorder %s952_s17, %s721_s8  ;;  %s726_s13 = sshll.u32 %s810_s12, 4  ;;  %s727_s13 = int_to_ptr.vmem [resolvable:$false] %s726_s13 }
  0x40   : > { %s728_s10 = scalar_lea.vmem %s727_s13, 512  ;;  %p729_p9 = scmp.lt.s32.totalorder %s952_s17, %s727_s13 }
  0x41   : > { %p724_p6 = pnand %p722_p1, %p710_p7  ;;  %p730_p5 = scmp.lt.s32.totalorder %s728_s10, %s721_s8 }
  0x43   : > { %p725_p11 = pneg %p724_p6  ;;  %p731_p4 = por %p730_p5, %p729_p9 }
  0x45   : > { %p732_p8 = pnand %p731_p4, %p725_p11 }
  0x47   : > { %735 = shalt.err (!%p732_p8)
}
  0x48   : > { %s1078_s26 = smov 8   ;;  %s1079_s11 = smov 128  }
  0x49   : > { %603 = dma.hbm_to_vmem [thread:$0]  (!%p954_p2), %s950_s15, 256, %s952_s17, %s958_s20, %s1079_s11, %s1079_s11, %s1078_s26  }
  0x4a   : > { %p1080_p1 = scmp.ne.s32.totalorder %s1074_s29, 0 }
  0x4b   : > { %s985_s12 = sand.u32 (!%p1080_p1), 1, %s796_s22   ;;  %p1081_p4 = scmp.ne.s32.totalorder (!%p1080_p1), %s1072_s27, 0 }
  0x4c   : > { %256 = sbr.rel (%p1080_p1) target bundleno = 613 (0x265), region = 44  ;;  %s554_s13 = sshll.u32 (!%p1080_p1), %s985_s12, 4 }
  0x4d   : > { %s259_s9 = scalar_lea.sflag (!%p1080_p1), [#allocation3], %s985_s12  ;;  %s262_s18 = scalar_lea.vmem (!%p1080_p1), [#allocation2], %s554_s13 }
  0x51   : > { %779 = dma.done.wait (%p1081_p4), %s259_s9, 256  }
  0x52   : > { %781 = vsyncadd (%p1081_p4), %s259_s9, 4294967040  ;;  %p1082_p6 = scmp.eq.s32.totalorder %s870_s25, 0 }
  0x54   : > { %783 = dma.done.wait (%p1082_p6), [#allocation6], 512   ;;  %p1083_p8 = pmov %p1082_p6 }
  0x55   : > { %vm310_vm0 = vcmask 130048   ;;  %v302_v0 = vld [vmem:[#allocation5 + $0x8] sm:$0xff]  ;;  %v301_v1 = vld [vmem:[#allocation5] sm:$0xff]  ;;  %v433_v29 = vld [vmem:[#allocation7] sm:$0xff]  ;;  %s569_s16 = sshll.u32 %s870_s25, 8  ;;  %s298_s8 = scalar_lea.vmem [#allocation8], %s554_s13 }
  0x56   : > { %785 = vsyncadd (%p1083_p8), [#allocation6], 4294966784  ;;  %v299_v2 = vld [vmem:[%s262_s18] sm:$0xff]  ;;  %574 = vmatprep.subr.mxu0 %v302_v0  ;;  %v300_v3 = vld [vmem:[%s262_s18 + $0x8] sm:$0xff]  ;;  %s453_s10 = sshll.u32 %s298_s8, 4  ;;  %s1014_s9 = scalar_lea.hbm %s1065_s6, %s569_s16  ;;  %s1016_s10 = int_to_ptr.vmem [resolvable:$true] %s453_s10 }
  0x57   : > { %578 = vmatprep.mubr.msk.f32.mxu0 %vm310_vm0, %v299_v2  ;;  %575 = vmatpush3.msra.mxu0 %v302_v0  ;;  %v558_v5 = vld [vmem:[%s1061_s2] ss:$0 sm:$0xff]  ;;  %v434_v34 = vld [vmem:[#allocation7 + $0x8] sm:$0xff]  ;;  %s440_s18 = scalar_lea.sflag [#allocation4], %s985_s12  ;;  %s736_s25 = scalar_lea.vmem %s1016_s10, 256 }
  0x58   : > { %576 = vmatprep.subr.mxu0 %v301_v1  ;;  %v561_v24 = vld [vmem:[%s1062_s3] ss:$0 sm:$0xff]  ;;  %p737_p5 = scmp.ne.s32.totalorder %s1016_s10, %s736_s25  ;;  %p1084_p2 = scmp.ne.s32.totalorder %s1076_s30, 0 }
  0x59   : > { %577 = vmatpush3.msra.mxu0 %v301_v1  ;;  %v562_v26 = vld [vmem:[%s1063_s4] ss:$0 sm:$0xff]  ;;  %s811_s13 = smov [#allocation8]  }
  0x5a   : > { %579 = vmatmul.mubr.msk.f32.vlgmr.msra.gmra.mxu0 %vm310_vm0, %v300_v3  ;;  %p738_p7 = pnand %p737_p5, %p1084_p2  ;;  %s740_s27 = sshll.u32 %s811_s13, 4  ;;  %s741_s27 = int_to_ptr.vmem [resolvable:$false] %s740_s27 }
  0x5b   : > { %s742_s29 = scalar_lea.vmem %s741_s27, 512  ;;  %p743_p13 = scmp.lt.s32.totalorder %s1016_s10, %s741_s27 }
  0x5c   : > { %p739_p12 = pneg %p738_p7  ;;  %p744_p0 = scmp.lt.s32.totalorder %s742_s29, %s736_s25 }
  0x5e   : > { %p745_p10 = por %p744_p0, %p743_p13 }
  0x60   : > { %p746_p3 = pnand %p745_p10, %p739_p12 }
 0x11a   : > { %v580_v4 = vpop.f32.mrf.mxu0 }
 0x11b   : > { %v389_v8 = vadd.f32 %v580_v4, %v558_v5 }
 0x11c   : > { %v383_v6 = vpop.f32.mrf.mxu0 }
 0x11d   : > { %v384_v7 = vadd.f32 %v558_v5, %v383_v6 }
 0x11f   : > { %394 = vadd.xlane.f32.xlu0 %v384_v7 }
 0x123   : > { %396 = vadd.xlane.f32.xlu0 %v389_v8 }
 0x1a8   : > { %v395_v9 = vpop.xlane.xlu0 %394 }
 0x1a9   : > { %v399_v10 = vmul.f32 0.0078125, %v395_v9 }
 0x1ab   : > { %v401_v11 = vsub.f32 %v384_v7, %v399_v10 }
 0x1ac   : > { %v397_v12 = vpop.xlane.xlu0 %396 }
 0x1ad   : > { %v400_v13 = vmul.f32 0.0078125, %v397_v12  ;;  %v403_v14 = vmul.f32 %v401_v11, %v401_v11 }
 0x1af   : > { %v402_v15 = vsub.f32 %v389_v8, %v400_v13  ;;  %405 = vadd.xlane.f32.xlu1 %v403_v14 }
 0x1b1   : > { %v404_v16 = vmul.f32 %v402_v15, %v402_v15 }
 0x1b3   : > { %407 = vadd.xlane.f32.xlu1 %v404_v16 }
 0x238   : > { %v406_v17 = vpop.xlane.xlu1 %405 }
 0x239   : > { %v409_v18 = vmul.f32 0.0078125, %v406_v17 }
 0x23b   : > { %v411_v19 = vadd.f32 1e-05, %v409_v18 }
 0x23c   : > { %v408_v20 = vpop.xlane.xlu1 %407 }
 0x23d   : > { %652 = vrsqrt.f32 %v411_v19  ;;  %v410_v21 = vmul.f32 0.0078125, %v408_v20 }
 0x23f   : > { %v412_v22 = vadd.f32 1e-05, %v410_v21 }
 0x241   : > { %654 = vrsqrt.f32 %v412_v22 }
 0x24a   : > { %v653_v23 = vpop.eup %652 }
 0x24b   : > { %v415_v25 = vmul.f32 %v653_v23, %v401_v11 }
 0x24d   : > { %v423_v27 = vmul.f32 %v561_v24, %v415_v25 }
 0x24e   : > { %v655_v28 = vpop.eup %654 }
 0x24f   : > { %v431_v30 = vadd.f32 %v562_v26, %v423_v27  ;;  %v416_v31 = vmul.f32 %v655_v28, %v402_v15 }
 0x251   : > { %v424_v32 = vmul.f32 %v561_v24, %v416_v31  ;;  %v435_v33 = vadd.f32 %v433_v29, %v431_v30 }
 0x253   : > { %v432_v35 = vadd.f32 %v562_v26, %v424_v32  ;;  %437 = vst [vmem:[%s298_s8] sm:$0xff] %v435_v33 }
 0x255   : > { %v436_v36 = vadd.f32 %v434_v34, %v432_v35 }
 0x257   : > { %438 = vst [vmem:[%s298_s8 + $0x8] sm:$0xff] %v436_v36 }
 0x258   : > { %749 = shalt.err (!%p746_p3)
}
 0x259   : > { %s750_s15 = scalar_lea.hbm %s1014_s9, 256  ;;  %s754_s14 = scalar_lea.hbm %s1065_s6, 512 }
 0x25a   : > { %p751_p11 = scmp.ne.s32.totalorder %s1014_s9, %s750_s15  ;;  %p755_p4 = scmp.lt.s32.totalorder %s1014_s9, %s1065_s6 }
 0x25b   : > { %p756_p6 = scmp.lt.s32.totalorder %s754_s14, %s750_s15 }
 0x25c   : > { %p752_p9 = pnand %p751_p11, %p1084_p2 }
 0x25d   : > { %p757_p8 = por %p756_p6, %p755_p4 }
 0x25e   : > { %p753_p1 = pneg %p752_p9 }
 0x260   : > { %p758_p5 = pnand %p757_p8, %p753_p1 }
 0x262   : > { %761 = shalt.err (!%p758_p5)
}
 0x263   : > { %s812_s26 = smov 128   ;;  %s813_s11 = smov 8  }
 0x264   : > { %591 = dma.vmem_to_hbm [thread:$0]  (%p1084_p2), %s1016_s10, 256, %s1014_s9, %s440_s18, %s812_s26, %s812_s26, %s813_s11  }
 0x265 PF: > { %s468_s25 = sand.u32 1, %s792_s21   ;;  %p1085_p7 = scmp.ne.s32.totalorder %s1073_s28, 0 }
 0x266   : > { %p1086_p12 = scmp.ge.s32.totalorder %s804_s24, 2  ;;  %s469_s13 = scalar_lea.sflag [#allocation4], %s468_s25 }
 0x268   : > { %p605_p13 = pnand %p1086_p12, %p1085_p7 }
 0x26a   : > { %p606_p0 = pneg %p605_p13 }
 0x26c   : > { %787 = dma.done.wait (%p606_p0), %s469_s13, 256  }
 0x26d   : > { %789 = vsyncadd (%p606_p0), %s469_s13, 4294967040  ;;  %p20_p10 = scmp.ge.s32.totalorder %s927_s19, 4   ;;  %s1087_s21 = smov %s796_s22 }
 0x26e   : > { %s1088_s22 = smov %s800_s23  ;;  %s1089_s23 = smov %s943_s7 }
 0x26f   : > { %s1090_s24 = smov %s927_s19  ;;  %22 = sbr.rel (!%p20_p10) target bundleno = 6 (0x6), region = 97 }
 0x274   :  { %474 = vsyncpa [#allocation3], 1 }
 0x275   :  { %476 = vsyncpa [#allocation3 + $0x1], 1 }
 0x276   :  { %477 = vsyncpa [#allocation6], 1 }
 0x277   :  { %478 = vsyncpa [#allocation4], 1 }
 0x278   :  { %480 = vsyncpa [#allocation4 + $0x1], 1 }

</bundles_post_ra>
